<compile_context>
chip_gen: v5e
topology: v5e:2x2
jax: 0.10.0
libtpu: 0.0.40
codegen_flags: <defaults>
</compile_context>

<pallas_src>
import math

import jax
import jax.numpy as jnp
from jax.experimental import pallas as pl
from jax.experimental.pallas import tpu as pltpu

_TWO_PI = 2.0 * math.pi
_SQRT2 = math.sqrt(2.0)

# Double-buffered VMEM byte budget for one batch tile. 8 MiB stays well inside
# v5e's 16 MiB default scoped VMEM and leaves headroom on v7x (64 MiB physical,
# 32 MiB default scoped); measured tile sweeps show >=512-row tiles already hit
# ~85% of HBM roofline, so this cap costs nothing on v6e either.
_VMEM_TILE_BUDGET = 8 * 1024 * 1024
# Below this many resident bytes the no-grid whole-array path is used.
_SMALL_PATH_BYTES = 2 * 1024 * 1024


def fourier_encoder_kernel(t_ref, w_ref, out_ref):
    """t_ref: (tb, 1) f32, w_ref: (1, half_dim) f32, out_ref: (tb, 2*half_dim)."""
    half_dim = w_ref.shape[1]
    # Scale the narrow weights row, not the lane-padded t column: free VALU win.
    w2pi = w_ref[...] * _TWO_PI
    freqs = t_ref[...] * w2pi                      # (tb, half_dim) via broadcast
    # Two static-slice stores (no concat): lane-dense / unmasked when
    # half_dim % 128 == 0. Math in f32, cast only at the store.
    out_ref[:, :half_dim] = (jnp.sin(freqs) * _SQRT2).astype(out_ref.dtype)
    out_ref[:, half_dim:] = (jnp.cos(freqs) * _SQRT2).astype(out_ref.dtype)


def _choose_batch_tile(bs, dim, out_itemsize, block_bs):
    # Double-buffered bytes per batch row: output tile + lane-padded (tb, 1) t
    # column (128 lanes x 4 B even though the payload is 4 B/row).
    per_row = 2 * (dim * out_itemsize + 128 * 4)
    tb = max(8, _VMEM_TILE_BUDGET // per_row)
    tb = min(tb, block_bs, bs)
    # Give the "parallel" batch axis at least ~4 grid steps so v7x's two
    # TensorCores each get >= 2 steps (harmless on single-TC v5e/v6e).
    if bs >= 32:
        tb = min(tb, -(-bs // 4))
    return max(8, (tb // 8) * 8)


def fourier_encoder(t, weights, *, block_bs=1024, out_dtype=jnp.float32,
                    small_path_bytes=_SMALL_PATH_BYTES):
    """t: (bs, 1, 1, 1) float; weights: (1, half_dim) float -> (bs, 2*half_dim).

    Set out_dtype=jnp.bfloat16 when the consumer is bf16: halves the HBM
    write-back (the dominant traffic) on write-bound generations (v5e).
    """
    bs = t.shape[0]
    half_dim = weights.shape[1]
    dim = 2 * half_dim
    out_itemsize = jnp.dtype(out_dtype).itemsize

    t2d = t.reshape(bs, 1).astype(jnp.float32)      # glue reshape outside kernel
    w = weights.astype(jnp.float32)

    cost = pl.CostEstimate(
        flops=4 * bs * half_dim,
        transcendentals=2 * bs * half_dim,
        bytes_accessed=4 * (bs + half_dim) + bs * dim * out_itemsize,
    )
    out_shape = jax.ShapeDtypeStruct((bs, dim), out_dtype)

    # Gate the no-grid path on bytes, not rows: whole-array residency is only
    # OK while the output + lane-padded t column fit comfortably in VMEM.
    resident_bytes = bs * dim * out_itemsize + bs * 128 * 4 + 8 * half_dim * 4
    if resident_bytes <= small_path_bytes:
        # Small problem: one full-array VMEM block, no grid -> no pipeline
        # prologue/epilogue, no double-buffer allocation.
        return pl.pallas_call(
            fourier_encoder_kernel,
            out_shape=out_shape,
            in_specs=[
                pl.BlockSpec(memory_space=pltpu.MemorySpace.VMEM),
                pl.BlockSpec(memory_space=pltpu.MemorySpace.VMEM),
            ],
            out_specs=pl.BlockSpec(memory_space=pltpu.MemorySpace.VMEM),
            cost_estimate=cost,
        )(t2d, w)

    # Large problem: tile over bs so the output write-back DMA double-buffers
    # against sin/cos compute of the next block and the parallel axis can shard
    # across TensorCores (v7x).
    tb = _choose_batch_tile(bs, dim, out_itemsize, block_bs)
    tile_bytes = 2 * (tb * dim * out_itemsize + tb * 128 * 4 + 8 * half_dim * 4)
    compiler_kwargs = dict(dimension_semantics=("parallel",))
    if tile_bytes > 14 * 1024 * 1024:   # only if the budget was overridden upward
        compiler_kwargs["vmem_limit_bytes"] = int(tile_bytes + 4 * 1024 * 1024)

    # TODO(synk): add a second "parallel" grid axis over the feature dimension
    # (block a multiple of 128) if half_dim ever gets large (>= 2048); at
    # diffusion time-embedding sizes (half_dim <= ~512) batch tiling suffices.
    return pl.pallas_call(
        fourier_encoder_kernel,
        out_shape=out_shape,
        grid=(pl.cdiv(bs, tb),),
        in_specs=[
            pl.BlockSpec((tb, 1), lambda i: (i, 0)),
            pl.BlockSpec((1, half_dim), lambda i: (0, 0)),
        ],
        out_specs=pl.BlockSpec((tb, dim), lambda i: (i, 0)),
        compiler_params=pltpu.CompilerParams(**compiler_kwargs),
        cost_estimate=cost,
    )(t2d, w)


def fourier_encoder_ref(t, weights):
    """Pure-JAX reference mirroring the PyTorch forward."""
    bs = t.shape[0]
    t2d = t.reshape(bs, 1).astype(jnp.float32)
    freqs = t2d * weights * (2.0 * math.pi)
    return jnp.concatenate([jnp.sin(freqs), jnp.cos(freqs)], axis=-1) * math.sqrt(2.0)


if __name__ == "__main__":
    key = jax.random.PRNGKey(0)
    k_t, k_w, k_t2, k_w2 = jax.random.split(key, 4)

    # Toy size matching the module signature: t (bs,1,1,1), weights (1, half_dim).
    bs, dim = 2, 32
    half_dim = dim // 2
    weights = jax.random.normal(k_w, (1, half_dim), dtype=jnp.float32)
    t = jax.random.uniform(k_t, (bs, 1, 1, 1), dtype=jnp.float32)

    out = jax.block_until_ready(fourier_encoder(t, weights))
    ref = fourier_encoder_ref(t, weights)
    assert out.shape == (bs, dim), out.shape
    assert jnp.allclose(out, ref, atol=1e-5, rtol=1e-5), "mismatch vs reference (small path)"

    # Exercise the tiled (grid) path at a modest, lane-dense size by forcing it
    # past the small-path byte gate.
    bs2, dim2 = 512, 256
    weights2 = jax.random.normal(k_w2, (1, dim2 // 2), dtype=jnp.float32)
    t2 = jax.random.uniform(k_t2, (bs2, 1, 1, 1), dtype=jnp.float32)
    out2 = jax.block_until_ready(
        fourier_encoder(t2, weights2, small_path_bytes=0))
    ref2 = fourier_encoder_ref(t2, weights2)
    assert out2.shape == (bs2, dim2), out2.shape
    assert jnp.allclose(out2, ref2, atol=1e-5, rtol=1e-5), "mismatch vs reference (tiled path)"

    # bf16 output path (f32 math, cast at the store): halves HBM write-back.
    out3 = jax.block_until_ready(
        fourier_encoder(t2, weights2, out_dtype=jnp.bfloat16, small_path_bytes=0))
    assert out3.dtype == jnp.bfloat16
    assert jnp.allclose(out3.astype(jnp.float32), ref2, atol=2e-2, rtol=2e-2), \
        "mismatch vs reference (bf16 tiled path)"

    print("KERNEL_OK")
</pallas_src>

<mosaic_0001>
module attributes {stable_mosaic.version = 11 : i64} {
  func.func @fourier_encoder_kernel(%arg0: memref<2x1xf32, #tpu.memory_space<vmem>>, %arg1: memref<1x16xf32, #tpu.memory_space<vmem>>, %arg2: memref<2x32xf32, #tpu.memory_space<vmem>>) attributes {dimension_semantics = [], scalar_prefetch = 0 : i64, scratch_operands = 0 : i64, tpu.core_type = #tpu.core_type<tc>} {
    %c0 = arith.constant 0 : index
    %c0_0 = arith.constant 0 : index
    %0 = vector.load %arg1[%c0, %c0_0] : memref<1x16xf32, #tpu.memory_space<vmem>>, vector<1x16xf32>
    %cst = arith.constant 6.28318548 : f32
    %1 = vector.broadcast %cst : f32 to vector<1x16xf32>
    %2 = arith.mulf %0, %1 : vector<1x16xf32>
    %c0_1 = arith.constant 0 : index
    %c0_2 = arith.constant 0 : index
    %3 = vector.load %arg0[%c0_1, %c0_2] : memref<2x1xf32, #tpu.memory_space<vmem>>, vector<2x1xf32>
    %4 = vector.broadcast %3 : vector<2x1xf32> to vector<2x16xf32>
    %5 = vector.broadcast %2 : vector<1x16xf32> to vector<2x16xf32>
    %6 = arith.mulf %4, %5 : vector<2x16xf32>
    %7 = math.sin %6 : vector<2x16xf32>
    %cst_3 = arith.constant 1.41421354 : f32
    %8 = vector.broadcast %cst_3 : f32 to vector<2x16xf32>
    %9 = arith.mulf %7, %8 : vector<2x16xf32>
    %c0_4 = arith.constant 0 : index
    %c0_5 = arith.constant 0 : index
    %10 = vector.load %arg2[%c0_4, %c0_5] : memref<2x32xf32, #tpu.memory_space<vmem>>, vector<2x16xf32>
    tpu.vector_store %arg2[%c0_4, %c0_5], %9 {strides = array<i32>} : memref<2x32xf32, #tpu.memory_space<vmem>>, vector<2x16xf32>,
    %11 = math.cos %6 : vector<2x16xf32>
    %cst_6 = arith.constant 1.41421354 : f32
    %12 = vector.broadcast %cst_6 : f32 to vector<2x16xf32>
    %13 = arith.mulf %11, %12 : vector<2x16xf32>
    %c0_7 = arith.constant 0 : index
    %c16 = arith.constant 16 : index
    %14 = vector.load %arg2[%c0_7, %c16] : memref<2x32xf32, #tpu.memory_space<vmem>>, vector<2x16xf32>
    tpu.vector_store %arg2[%c0_7, %c16], %13 {strides = array<i32>} : memref<2x32xf32, #tpu.memory_space<vmem>>, vector<2x16xf32>,
    return
  }
}

</mosaic_0001>

<bundles_post_ra>
// kernel: tpu_custom_call.1
= control target key start
LH: loop header
LB: loop body
LE: loop exit
PB: predicated region body
PF: predicated region fallthrough
CT: control target
= control target key end

     0   :  { %v401_v1 = vmov 0   ;;  %s495_s0 = inlined_call_operand.vmem [shape: f32[2,1], index: 0, kind: input, shape index: {}]   ;;  %s496_s1 = inlined_call_operand.vmem [shape: f32[1,16], index: 1, kind: input, shape index: {}]   ;;  %s497_s2 = inlined_call_operand.hbm [shape: f32[2,32], index: 2, kind: output, shape index: {}]  }
   0x1   :  { %v14_v0 = vld [vmem:[%s495_s0] sm:$0x3]  ;;  %374 = vset.pattern.permute.xlu0 %v401_v1 }
   0x2   :  { %17 = vperm.xlu0 %374, %v14_v0  }
   0x3   :  { %7 = vsyncpa [#allocation3], 0  ;;  %v12_v2 = vld [vmem:[%s496_s1] sm:$0x1]  ;;  %v402_v18 = vmov 683565275  }
   0x4   :  { %v13_v3 = vmul.f32 6.2831855, %v12_v2  ;;  %v403_v20 = vmov 2475754826   ;;  %v404_v23 = vmov 2131351028  }
   0x5   :  { %v405_v26 = vmov 2102212464   ;;  %v406_v29 = vmov 920167782   ;;  %v407_v32 = vmov 1326507024  }
   0x6   :  { %v21_v4 = vperm.slane %v13_v3, 0  ;;  %s408_s0 = smov 16   ;;  %s409_s1 = smov [#allocation2]  }
   0x7   :  { %s348_s13 = sshll.u32 %s409_s1, 4  ;;  %s350_s16 = sshll.u32 %s497_s2, 4  ;;  %s349_s13 = int_to_ptr.vmem [resolvable:$true] %s348_s13  ;;  %s351_s16 = int_to_ptr.hbm [resolvable:$true] %s350_s16 }
  0x74   :  { %v18_v5 = vpop.permute.xlu0 %17 }
  0x75   :  { %v432_v6 = vmul.f32 %v21_v4, %v18_v5 }
  0x77   :  { %v27_v7 = vand.u32 2139095040, %v432_v6  ;;  %v24_v10 = vand.u32 2147483647, %v432_v6  ;;  %vm26_vm12 = vcmp.lt.s32.totalorder %v432_v6, 0 }
  0x79   :  { %v28_v8 = vshrl.u32 %v27_v7, 23  ;;  %v31_v12 = vand.u32 8388607, %v24_v10  ;;  %vm25_vm13 = vcmp.le.f32.partialorder %v24_v10, 0.7853982 }
  0x7b   :  { %v359_v9 = vadd.s32 4294967169, %v28_v8  ;;  %v32_v16 = vor.u32 8388608, %v31_v12 }
  0x7d   :  { %v34_v11 = vadd.s32 1, %v359_v9  ;;  %v449_v39 = vshll.u32 %v32_v16, 8 }
  0x7f   :  { %vm35_vm0 = vcmp.gt.s32.totalorder %v34_v11, 0  ;;  %v73_v48 = vand.u32 65535, %v449_v39  ;;  %v74_v49 = vshrl.u32 %v449_v39, 16 }
  0x80   :  { %v36_v13 = vsel %vm35_vm0, %v34_v11, 0 }
  0x81   :  { %v38_v14 = vand.u32 31, %v36_v13  ;;  %v440_v17 = vshrl.u32 %v36_v13, 5 }
  0x83   :  { %v438_v15 = vsub.s32 32, %v38_v14  ;;  %v41_v19 = vshll.u32 %v402_v18, %v38_v14  ;;  %v44_v21 = vshll.u32 %v403_v20, %v38_v14  ;;  %v47_v25 = vshll.u32 %v404_v23, %v38_v14 }
  0x84   :  { %v50_v28 = vshll.u32 %v405_v26, %v38_v14  ;;  %v53_v31 = vshll.u32 %v406_v29, %v38_v14  ;;  %vm56_vm1 = vcmp.lt.s32.totalorder %v440_v17, 1  ;;  %vm59_vm2 = vcmp.lt.s32.totalorder %v440_v17, 4 }
  0x85   :  { %v42_v22 = vshrl.u32 %v403_v20, %v438_v15  ;;  %v45_v24 = vshrl.u32 %v404_v23, %v438_v15  ;;  %v48_v27 = vshrl.u32 %v405_v26, %v438_v15  ;;  %v51_v30 = vshrl.u32 %v406_v29, %v438_v15 }
  0x86   :  { %v54_v33 = vshrl.u32 %v407_v32, %v438_v15  ;;  %vm58_vm3 = vcmp.lt.s32.totalorder %v440_v17, 3  ;;  %vm57_vm4 = vcmp.lt.s32.totalorder %v440_v17, 2  ;;  %v40_v13 = vshrl.u32 %v402_v18, %v438_v15 }
  0x87   :  { %v43_v34 = vor.u32 %v42_v22, %v41_v19  ;;  %v46_v35 = vor.u32 %v45_v24, %v44_v21  ;;  %v49_v36 = vor.u32 %v48_v27, %v47_v25  ;;  %v52_v37 = vor.u32 %v51_v30, %v50_v28 }
  0x88   :  { %v55_v38 = vor.u32 %v54_v33, %v53_v31 }
  0x89   :  { %v64_v40 = vsel %vm56_vm1, %v43_v34, %v46_v35  ;;  %v68_v41 = vsel %vm56_vm1, %v46_v35, %v49_v36  ;;  %v65_v42 = vsel %vm59_vm2, %v52_v37, 920167782  ;;  %v61_v9 = vsel %vm59_vm2, %v49_v36, 2102212464 }
  0x8a   :  { %v69_v43 = vsel %vm59_vm2, %v55_v38, 1326507024  ;;  %v66_v44 = vsel %vm58_vm3, %v49_v36, %v65_v42  ;;  %v60_v22 = vsel %vm56_vm1, %v40_v13, %v43_v34  ;;  %v62_v23 = vsel %vm58_vm3, %v46_v35, %v61_v9 }
  0x8b   :  { %v70_v45 = vsel %vm58_vm3, %v52_v37, %v69_v43  ;;  %v67_v46 = vsel %vm57_vm4, %v64_v40, %v66_v44  ;;  %v63_v15 = vsel %vm57_vm4, %v60_v22, %v62_v23 }
  0x8c   :  { %v71_v47 = vsel %vm57_vm4, %v68_v41, %v70_v45  ;;  %v97_v52 = vand.u32 65535, %v67_v46  ;;  %v98_v53 = vshrl.u32 %v67_v46, 16  ;;  %v117_v30 = vmul.u32 %v449_v39, %v63_v15 }
  0x8d   :  { %v75_v50 = vand.u32 65535, %v71_v47  ;;  %v76_v51 = vshrl.u32 %v71_v47, 16  ;;  %vm167_vm4 = vweird.f32 %v432_v6 }
  0x8e   :  { %v100_v56 = vmul.u32 %v98_v53, %v73_v48  ;;  %v101_v57 = vmul.u32 %v97_v52, %v74_v49  ;;  %v99_v61 = vmul.u32 %v97_v52, %v73_v48  ;;  %v102_v2 = vmul.u32 %v98_v53, %v74_v49 }
  0x8f   :  { %v78_v54 = vmul.u32 %v76_v51, %v73_v48  ;;  %v79_v55 = vmul.u32 %v75_v50, %v74_v49  ;;  %v77_v58 = vmul.u32 %v75_v50, %v73_v48  ;;  %v80_v60 = vmul.u32 %v76_v51, %v74_v49 }
  0x90   :  { %v103_v62 = vshll.u32 %v100_v56, 16  ;;  %v105_v4 = vshll.u32 %v101_v57, 16  ;;  %v104_v20 = vshrl.u32 %v100_v56, 16  ;;  %v106_v26 = vshrl.u32 %v101_v57, 16 }
  0x91   :  { %v81_v59 = vshll.u32 %v78_v54, 16  ;;  %v83_v63 = vshll.u32 %v79_v55, 16  ;;  %v82_v14 = vshrl.u32 %v78_v54, 16  ;;  %v84_v24 = vshrl.u32 %v79_v55, 16 }
  0x92   :  { %vm107_vm6 = vc.u32 %v99_v61, %v103_v62  ;;  %v109_v5 = vadd.s32 %v103_v62, %v99_v61 }
  0x93   :  { %vm85_vm5 = vc.u32 %v77_v58, %v81_v59  ;;  %v87_v0 = vadd.s32 %v81_v59, %v77_v58  ;;  %v108_v8 = vsel %vm107_vm6, 1, %v401_v1  ;;  %vm341_vm6 = vcmask 255104  }
  0x94   :  { %v86_v3 = vsel %vm85_vm5, 1, %v401_v1  ;;  %v110_v12 = vadd.s32 %v108_v8, %v102_v2  ;;  %vm111_vm8 = vc.u32 %v109_v5, %v105_v4  ;;  %v113_v29 = vadd.s32 %v109_v5, %v105_v4 }
  0x95   :  { %v88_v7 = vadd.s32 %v86_v3, %v80_v60  ;;  %vm89_vm7 = vc.u32 %v87_v0, %v83_v63  ;;  %v112_v19 = vsel %vm111_vm8, 1, %v401_v1  ;;  %vm180_vm5 = vcmask 123904  }
  0x96   :  { %v90_v11 = vsel %vm89_vm7, 1, %v401_v1  ;;  %v114_v21 = vadd.s32 %v112_v19, %v110_v12 }
  0x97   :  { %v92_v16 = vadd.s32 %v90_v11, %v88_v7 }
  0x98   :  { %v115_v27 = vadd.s32 %v114_v21, %v104_v20 }
  0x99   :  { %v93_v25 = vadd.s32 %v92_v16, %v82_v14 }
  0x9a   :  { %v116_v18 = vadd.s32 %v115_v27, %v106_v26 }
  0x9b   :  { %v94_v28 = vadd.s32 %v93_v25, %v84_v24 }
  0x9c   :  { %v120_v1 = vadd.s32 1, %v116_v18 }
  0x9d   :  { %vm119_vm9 = vc.u32 %v94_v28, %v113_v29  ;;  %v118_v17 = vadd.s32 %v113_v29, %v94_v28 }
  0x9e   :  { %v121_v31 = vsel %vm119_vm9, %v120_v1, %v116_v18 }
  0x9f   :  { %v122_v32 = vadd.s32 %v121_v31, %v117_v30 }
  0xa1   :  { %v123_v33 = vadd.s32 536870912, %v122_v32 }
  0xa3   :  { %v124_v34 = vshrl.u32 %v123_v33, 30 }
  0xa5   :  { %v125_v36 = vshll.u32 %v124_v34, 30  ;;  %v148_v55 = vsub.s32 4, %v124_v34 }
  0xa7   :  { %v126_v35 = vsub.s32 %v122_v32, %v125_v36  ;;  %v149_v60 = vsel %vm26_vm12, %v148_v55, %v124_v34 }
  0xa8   :  { %v151_v63 = vsel %vm25_vm13, 0, %v149_v60 }
  0xa9   :  { %vm127_vm10 = vcmp.lt.s32.totalorder %v126_v35, 0  ;;  %v128_v37 = vsub.s32 0, %v126_v35  ;;  %v168_v5 = vadd.s32 3, %v151_v63  ;;  %v326_v11 = vand.u32 3, %v151_v63 }
  0xab   :  { %v129_v38 = vsel %vm127_vm10, %v128_v37, %v126_v35  ;;  %v169_v12 = vand.u32 3, %v168_v5  ;;  %vm327_vm14 = vcmp.lt.s32.totalorder %v326_v11, 2  ;;  %vm328_vm15 = vcmp.eq.s32.totalorder %v326_v11, 0 }
  0xac   :  { %v130_v40 = vclz %v129_v38  ;;  %vm331_vm0 = vcmp.eq.s32.totalorder %v326_v11, 2 }
  0xad   :  { %vm170_vm1 = vcmp.lt.s32.totalorder %v169_v12, 2  ;;  %vm171_vm2 = vcmp.eq.s32.totalorder %v169_v12, 0  ;;  %vm174_vm3 = vcmp.eq.s32.totalorder %v169_v12, 2 }
  0xae   :  { %v360_v41 = vadd.s32 4294967294, %v130_v40 }
  0xb0   :  { %vm361_vm11 = vcmp.lt.s32.totalorder %v360_v41, 0 }
  0xb1   :  { %v133_v42 = vsel %vm361_vm11, 0, %v360_v41 }
  0xb2   :  { %v134_v43 = vsub.s32 32, %v133_v42  ;;  %v138_v44 = vsub.s32 4294967266, %v133_v42  ;;  %v135_v45 = vshll.u32 %v126_v35, %v133_v42 }
  0xb4   :  { %v136_v46 = vshrl.u32 %v118_v17, %v134_v43  ;;  %v139_v47 = vadd.s32 127, %v138_v44 }
  0xb6   :  { %v137_v39 = vor.u32 %v136_v46, %v135_v45  ;;  %v140_v48 = vshll.u32 %v139_v47, 23 }
  0xb8   :  { %v141_v49 = vor.u32 4788187, %v140_v48  ;;  %v144_v51 = vcvt.s32.f32 %v137_v39 }
  0xba   :  { %v142_v50 = vand.u32 2147483647, %v141_v49 }
  0xbc   :  { %v145_v52 = vmul.f32 %v144_v51, %v142_v50 }
  0xbe   :  { %v146_v53 = vxor.u32 2147483648, %v145_v52 }
  0xc0   :  { %v147_v54 = vsel %vm26_vm12, %v146_v53, %v145_v52 }
  0xc1   :  { %v150_v56 = vsel %vm25_vm13, %v432_v6, %v147_v54 }
  0xc2   :  { %v152_v57 = vmul.f32 %v150_v56, %v150_v56 }
  0xc4   :  { %v153_v58 = vmul.f32 -0.001358992, %v152_v57  ;;  %v160_v59 = vmul.f32 -0.00019511016, %v152_v57 }
  0xc6   :  { %v154_v61 = vadd.f32 0.041655596, %v153_v58  ;;  %v161_v62 = vadd.f32 0.008332121, %v160_v59 }
  0xc8   :  { %v155_v0 = vmul.f32 %v154_v61, %v152_v57  ;;  %v162_v2 = vmul.f32 %v161_v62, %v152_v57 }
  0xca   :  { %v156_v3 = vadd.f32 -0.4999988, %v155_v0  ;;  %v163_v4 = vadd.f32 -0.16666654, %v162_v2 }
  0xcc   :  { %v157_v7 = vmul.f32 %v156_v3, %v152_v57  ;;  %v164_v8 = vmul.f32 %v163_v4, %v152_v57 }
  0xce   :  { %v158_v9 = vadd.f32 1.0, %v157_v7  ;;  %v165_v10 = vadd.f32 1.0, %v164_v8 }
  0xd0   :  { %v166_v13 = vmul.f32 %v165_v10, %v150_v56  ;;  %v175_v14 = vxor.u32 2147483648, %v158_v9 }
  0xd2   :  { %v172_v16 = vxor.u32 2147483648, %v166_v13  ;;  %v333_v20 = vsel %vm331_vm0, %v175_v14, %v166_v13  ;;  %v176_v22 = vsel %vm174_vm3, %v175_v14, %v166_v13 }
  0xd4   :  { %v330_v19 = vsel %vm328_vm15, %v158_v9, %v172_v16  ;;  %v173_v21 = vsel %vm171_vm2, %v158_v9, %v172_v16 }
  0xd5   :  { %v334_v23 = vsel %vm327_vm14, %v330_v19, %v333_v20  ;;  %v177_v24 = vsel %vm170_vm1, %v173_v21, %v176_v22 }
  0xd6   :  { %v335_v25 = vsel %vm167_vm4, nan, %v334_v23  ;;  %v178_v26 = vsel %vm167_vm4, nan, %v177_v24 }
  0xd7   :  { %v336_v27 = vmul.f32 1.4142135, %v335_v25  ;;  %v179_v28 = vmul.f32 1.4142135, %v178_v26 }
  0xd9   :  { %338 = vrot.lane.b32.xlu0 %v336_v27, %s408_s0  ;;  %181 = vst.msk [vmem:[#allocation2] sm:$0x3] %vm180_vm5, %v179_v28 }
 0x14b   :  { %v339_v6 = vpop.permute.xlu0 %338 }
 0x14c   :  { %342 = vst.msk [vmem:[#allocation2] sm:$0x3] %vm341_vm6, %v339_v6 }
 0x14d   :  { %353 = dma.vmem_to_hbm [thread:$0]  %s349_s13, 32, %s351_s16, [#allocation3]  }
 0x14e   :  { %399 = dma.done.wait [#allocation3], 32  }
 0x14f   :  { %400 = vsyncadd [#allocation3], 4294967264 }
 0x150   :  { %358 = vsyncpa [#allocation3], 1 }

</bundles_post_ra>
